<compile_context>
chip_gen: v7x
topology: tpu7x:2x2x1
jax: 0.10.0
libtpu: 0.0.40
codegen_flags: <defaults>
</compile_context>

<pallas_src>
import functools

import jax
import jax.numpy as jnp
from jax.experimental import pallas as pl
from jax.experimental.pallas import tpu as pltpu


HIDDEN = 256
HEAD2_WIDTH = 128   # lane-dense fused head-2 output width (>= out_dim + 1)


def ppo_forward_kernel(x_ref,
                       w1_ref, b1_ref,
                       wh1_ref, bh1_ref,
                       wh2_ref, bh2_ref,
                       out_ref, *, out_dim):
    x = x_ref[...]                                                     # [B, in_dim] f32

    # Shared trunk: fc1 + relu (bf16 into MXU, f32 accumulate / VPU math).
    h = jnp.dot(x.astype(jnp.bfloat16), w1_ref[...],
                preferred_element_type=jnp.float32) + b1_ref[...]
    h = jnp.maximum(h, 0.0)                                            # [B, 256]

    # Fused head layer 1: one matmul yields concat(hp, hv).
    hh = jnp.dot(h.astype(jnp.bfloat16), wh1_ref[...],
                 preferred_element_type=jnp.float32) + bh1_ref[...]
    hh = jnp.maximum(hh, 0.0)                                          # [B, 512]

    # Fused head layer 2: block-diagonal weight, lane-dense [B, 128] result
    # (lanes 0..out_dim-1 = logits, lane out_dim = v, rest = 0).
    out = jnp.dot(hh.astype(jnp.bfloat16), wh2_ref[...],
                  preferred_element_type=jnp.float32) + bh2_ref[...]   # [B, 128]

    # Softmax over dim=0 (batch axis), applied column-wise to the whole slab;
    # the value/padding lanes keep their raw affine values via the lane mask.
    m = jnp.max(out, axis=0, keepdims=True)                            # [1, 128]
    e = jnp.exp(out - m)                                               # [B, 128]
    inv = pl.reciprocal(jnp.sum(e, axis=0, keepdims=True), approx=True)
    prob = e * inv

    lane = jax.lax.broadcasted_iota(jnp.int32, out.shape, 1)
    out_ref[...] = jnp.where(lane < out_dim, prob, out)


def ppo_forward(x, params):
    """Runs the PPO forward pass: returns (prob [B, out_dim], v [B, 1])."""
    B, in_dim = x.shape
    out_dim = params["out_dim"]

    vmem = pl.BlockSpec(memory_space=pltpu.MemorySpace.VMEM)
    args = (x,
            params["w1"], params["b1"],
            params["wh1"], params["bh1"],
            params["wh2"], params["bh2"])

    weight_bytes = 2 * (in_dim * HIDDEN + HIDDEN * 2 * HIDDEN + 2 * HIDDEN * HEAD2_WIDTH)
    bias_bytes = 4 * (HIDDEN + 2 * HIDDEN + HEAD2_WIDTH)
    io_bytes = 4 * (B * in_dim + B * HEAD2_WIDTH)
    cost = pl.CostEstimate(
        flops=2 * B * (in_dim * HIDDEN + HIDDEN * 2 * HIDDEN + 2 * HIDDEN * HEAD2_WIDTH),
        transcendentals=B * HEAD2_WIDTH,
        bytes_accessed=weight_bytes + bias_bytes + io_bytes,
    )

    fused = pl.pallas_call(
        functools.partial(ppo_forward_kernel, out_dim=out_dim),
        out_shape=jax.ShapeDtypeStruct((B, HEAD2_WIDTH), jnp.float32),
        in_specs=[vmem] * len(args),
        out_specs=vmem,
        cost_estimate=cost,
    )(*args)

    prob = fused[:, :out_dim]
    v = fused[:, out_dim:out_dim + 1]
    return prob, v


def init_params(key, in_dim, out_dim):
    """Deterministic init mimicking nn.Linear (uniform +-1/sqrt(fan_in)).

    Weights stored pre-transposed ([in_features, out_features]) and fused:
      wh1 = [wp1 | wv1]            -> [256, 512]            (bf16)
      wh2 = blockdiag(wp2, wv2)    -> [512, 128] lane-padded (bf16)
    Biases stay f32; bp2/bv2 are folded into the fused head-2 bias.
    """
    def linear(k, fan_in, fan_out):
        kw, kb = jax.random.split(k)
        bound = 1.0 / jnp.sqrt(fan_in)
        w = jax.random.uniform(kw, (fan_in, fan_out), jnp.float32, -bound, bound)
        b = jax.random.uniform(kb, (1, fan_out), jnp.float32, -bound, bound)
        return w, b

    k1, k2, k3, k4, k5 = jax.random.split(key, 5)
    w1, b1 = linear(k1, in_dim, HIDDEN)
    wp1, bp1 = linear(k2, HIDDEN, HIDDEN)
    wp2, bp2 = linear(k3, HIDDEN, out_dim)
    wv1, bv1 = linear(k4, HIDDEN, HIDDEN)
    wv2, bv2 = linear(k5, HIDDEN, 1)

    # Fused head layer 1.
    wh1 = jnp.concatenate([wp1, wv1], axis=1)              # [256, 512]
    bh1 = jnp.concatenate([bp1, bv1], axis=1)               # [1, 512]

    # Fused, block-diagonal, lane-padded head layer 2.
    wh2 = jnp.zeros((2 * HIDDEN, HEAD2_WIDTH), jnp.float32)
    wh2 = wh2.at[:HIDDEN, :out_dim].set(wp2)                 # policy logits lanes
    wh2 = wh2.at[HIDDEN:, out_dim:out_dim + 1].set(wv2)      # value lane
    bh2 = jnp.zeros((1, HEAD2_WIDTH), jnp.float32)
    bh2 = bh2.at[:, :out_dim].set(bp2)
    bh2 = bh2.at[:, out_dim:out_dim + 1].set(bv2)

    return dict(w1=w1.astype(jnp.bfloat16), b1=b1,
                wh1=wh1.astype(jnp.bfloat16), bh1=bh1,
                wh2=wh2.astype(jnp.bfloat16), bh2=bh2,
                out_dim=out_dim)


def ppo_forward_ref(x, p):
    """Plain-JAX reference mirroring the PyTorch forward() on the same
    (bf16-stored, fused) parameters."""
    out_dim = p["out_dim"]
    bf = jnp.bfloat16
    h = jnp.maximum(jnp.dot(x.astype(bf), p["w1"],
                            preferred_element_type=jnp.float32) + p["b1"], 0.0)
    hh = jnp.maximum(jnp.dot(h.astype(bf), p["wh1"],
                             preferred_element_type=jnp.float32) + p["bh1"], 0.0)
    out = jnp.dot(hh.astype(bf), p["wh2"],
                  preferred_element_type=jnp.float32) + p["bh2"]
    logits = out[:, :out_dim]
    v = out[:, out_dim:out_dim + 1]
    prob = jax.nn.softmax(logits, axis=0)                    # softmax_dim=0
    return prob, v


if __name__ == "__main__":
    key = jax.random.PRNGKey(0)
    k_x, k_p = jax.random.split(key)

    B, in_dim, out_dim = 4, 32, 8
    x = jax.random.normal(k_x, (B, in_dim), jnp.float32)
    params = init_params(k_p, in_dim, out_dim)

    prob, v = ppo_forward(x, params)
    jax.block_until_ready((prob, v))

    prob_ref, v_ref = ppo_forward_ref(x, params)
    assert prob.shape == (B, out_dim) and v.shape == (B, 1)
    assert jnp.allclose(prob, prob_ref, atol=2e-3, rtol=2e-3)
    assert jnp.allclose(v, v_ref, atol=2e-3, rtol=2e-3)
    # Probabilities in pi normalize over the batch axis (dim=0), as in the module.
    assert jnp.allclose(jnp.sum(prob, axis=0), jnp.ones((out_dim,)), atol=2e-3)

    print("KERNEL_OK")
</pallas_src>

<mosaic_0001>
module attributes {stable_mosaic.version = 11 : i64} {
  func.func @ppo_forward_kernel(%arg0: memref<4x32xf32, #tpu.memory_space<vmem>>, %arg1: memref<32x256xbf16, #tpu.memory_space<vmem>>, %arg2: memref<1x256xf32, #tpu.memory_space<vmem>>, %arg3: memref<256x512xbf16, #tpu.memory_space<vmem>>, %arg4: memref<1x512xf32, #tpu.memory_space<vmem>>, %arg5: memref<512x128xbf16, #tpu.memory_space<vmem>>, %arg6: memref<1x128xf32, #tpu.memory_space<vmem>>, %arg7: memref<4x128xf32, #tpu.memory_space<vmem>>) attributes {dimension_semantics = [], scalar_prefetch = 0 : i64, scratch_operands = 0 : i64, tpu.core_type = #tpu.core_type<tc>} {
    %c0 = arith.constant 0 : index
    %c0_0 = arith.constant 0 : index
    %0 = vector.load %arg0[%c0, %c0_0] : memref<4x32xf32, #tpu.memory_space<vmem>>, vector<4x32xf32>
    %1 = arith.truncf %0 : vector<4x32xf32> to vector<4x32xbf16>
    %c0_1 = arith.constant 0 : index
    %c0_2 = arith.constant 0 : index
    %2 = vector.load %arg1[%c0_1, %c0_2] : memref<32x256xbf16, #tpu.memory_space<vmem>>, vector<32x256xbf16>
    %cst = arith.constant dense<0.000000e+00> : vector<4x256xf32>
    %3 = tpu.matmul %1, %2, %cst {dimension_numbers = #tpu.dot_dimension_numbers<[1], [0], [0], [1], [0, 0, 1, 1], [], []>} : vector<4x32xbf16>, vector<32x256xbf16>, vector<4x256xf32> -> vector<4x256xf32>
    %c0_3 = arith.constant 0 : index
    %c0_4 = arith.constant 0 : index
    %4 = vector.load %arg2[%c0_3, %c0_4] : memref<1x256xf32, #tpu.memory_space<vmem>>, vector<1x256xf32>
    %5 = vector.broadcast %4 : vector<1x256xf32> to vector<4x256xf32>
    %6 = arith.addf %3, %5 : vector<4x256xf32>
    %cst_5 = arith.constant 0.000000e+00 : f32
    %7 = vector.broadcast %cst_5 : f32 to vector<4x256xf32>
    %8 = arith.maximumf %6, %7 : vector<4x256xf32>
    %9 = arith.truncf %8 : vector<4x256xf32> to vector<4x256xbf16>
    %c0_6 = arith.constant 0 : index
    %c0_7 = arith.constant 0 : index
    %10 = vector.load %arg3[%c0_6, %c0_7] : memref<256x512xbf16, #tpu.memory_space<vmem>>, vector<256x512xbf16>
    %cst_8 = arith.constant dense<0.000000e+00> : vector<4x512xf32>
    %11 = tpu.matmul %9, %10, %cst_8 {dimension_numbers = #tpu.dot_dimension_numbers<[1], [0], [0], [1], [0, 0, 1, 1], [], []>} : vector<4x256xbf16>, vector<256x512xbf16>, vector<4x512xf32> -> vector<4x512xf32>
    %c0_9 = arith.constant 0 : index
    %c0_10 = arith.constant 0 : index
    %12 = vector.load %arg4[%c0_9, %c0_10] : memref<1x512xf32, #tpu.memory_space<vmem>>, vector<1x512xf32>
    %13 = vector.broadcast %12 : vector<1x512xf32> to vector<4x512xf32>
    %14 = arith.addf %11, %13 : vector<4x512xf32>
    %cst_11 = arith.constant 0.000000e+00 : f32
    %15 = vector.broadcast %cst_11 : f32 to vector<4x512xf32>
    %16 = arith.maximumf %14, %15 : vector<4x512xf32>
    %17 = arith.truncf %16 : vector<4x512xf32> to vector<4x512xbf16>
    %c0_12 = arith.constant 0 : index
    %c0_13 = arith.constant 0 : index
    %18 = vector.load %arg5[%c0_12, %c0_13] : memref<512x128xbf16, #tpu.memory_space<vmem>>, vector<512x128xbf16>
    %cst_14 = arith.constant dense<0.000000e+00> : vector<4x128xf32>
    %19 = tpu.matmul %17, %18, %cst_14 {dimension_numbers = #tpu.dot_dimension_numbers<[1], [0], [0], [1], [0, 0, 1, 1], [], []>} : vector<4x512xbf16>, vector<512x128xbf16>, vector<4x128xf32> -> vector<4x128xf32>
    %c0_15 = arith.constant 0 : index
    %c0_16 = arith.constant 0 : index
    %20 = vector.load %arg6[%c0_15, %c0_16] : memref<1x128xf32, #tpu.memory_space<vmem>>, vector<1x128xf32>
    %21 = vector.broadcast %20 : vector<1x128xf32> to vector<4x128xf32>
    %22 = arith.addf %19, %21 : vector<4x128xf32>
    %cst_17 = arith.constant dense<0xFF800000> : vector<128xf32>
    %23 = vector.multi_reduction <maximumf>, %22, %cst_17 [0] : vector<4x128xf32> to vector<128xf32>
    %24 = vector.shape_cast %23 : vector<128xf32> to vector<1x128xf32>
    %25 = vector.broadcast %24 : vector<1x128xf32> to vector<4x128xf32>
    %26 = arith.subf %22, %25 : vector<4x128xf32>
    %27 = math.exp %26 : vector<4x128xf32>
    %cst_18 = arith.constant dense<0.000000e+00> : vector<128xf32>
    %28 = vector.multi_reduction <add>, %27, %cst_18 [0] : vector<4x128xf32> to vector<128xf32>
    %29 = vector.shape_cast %28 : vector<128xf32> to vector<1x128xf32>
    %30 = tpu.reciprocal %29 {approx = true} : vector<1x128xf32> -> vector<1x128xf32>
    %31 = vector.broadcast %30 : vector<1x128xf32> to vector<4x128xf32>
    %32 = arith.mulf %27, %31 : vector<4x128xf32>
    %33 = tpu.iota {dimensions = array<i32: 1>} : vector<4x128xi32>
    %c8_i32 = arith.constant 8 : i32
    %34 = vector.broadcast %c8_i32 : i32 to vector<4x128xi32>
    %35 = arith.cmpi slt, %33, %34 : vector<4x128xi32>
    %36 = arith.select %35, %32, %22 : vector<4x128xi1>, vector<4x128xf32>
    %c0_19 = arith.constant 0 : index
    %c0_20 = arith.constant 0 : index
    %37 = vector.load %arg7[%c0_19, %c0_20] : memref<4x128xf32, #tpu.memory_space<vmem>>, vector<4x128xf32>
    tpu.vector_store %arg7[%c0_19, %c0_20], %36 {strides = array<i32>} : memref<4x128xf32, #tpu.memory_space<vmem>>, vector<4x128xf32>,
    return
  }
}

</mosaic_0001>

<bundles_post_ra>
// kernel: tpu_custom_call.1
= control target key start
LH: loop header
LB: loop body
LE: loop exit
PB: predicated region body
PF: predicated region fallthrough
CT: control target
= control target key end

     0   :  { %12 = vsyncpa [#allocation3], 0  ;;  %s1600_s0 = inlined_call_operand.hbm [shape: f32[4,32], index: 0, kind: input, shape index: {}]   ;;  %s1601_s1 = inlined_call_operand.hbm [shape: bf16[32,256], index: 1, kind: input, shape index: {}]   ;;  %s1602_s2 = inlined_call_operand.vmem [shape: f32[1,256], index: 2, kind: input, shape index: {}]   ;;  %s1603_s3 = inlined_call_operand.hbm [shape: bf16[256,512], index: 3, kind: input, shape index: {}]   ;;  %s1604_s4 = inlined_call_operand.vmem [shape: f32[1,512], index: 4, kind: input, shape index: {}]   ;;  %s1605_s5 = inlined_call_operand.hbm [shape: bf16[512,128], index: 5, kind: input, shape index: {}]   ;;  %s1606_s6 = inlined_call_operand.vmem [shape: f32[1,128], index: 6, kind: input, shape index: {}]   ;;  %s1607_s7 = inlined_call_operand.hbm [shape: f32[4,128], index: 7, kind: output, shape index: {}]  }
   0x1   :  { %13 = vsyncpa [#allocation6], 0 }
   0x2   :  { %14 = vsyncpa [#allocation9], 0 }
   0x3   :  { %15 = vsyncpa [#allocation4], 0  ;;  %s1463_s24 = smov [#allocation5]   ;;  %s1345_s28 = scalar_lea.hbm %s1601_s1, 512 }
   0x4   :  { %s31_s25 = sshll.u32 %s1463_s24, 4  ;;  %p1346_p0 = scmp.ne.s32.totalorder %s1601_s1, %s1345_s28  ;;  %s32_s25 = int_to_ptr.vmem [resolvable:$true] %s31_s25 }
   0x5   :  { %p1349_p1 = scmp.lt.u32.totalorder %s1345_s28, %s1601_s1 }
   0x7   :  { %p1351_p2 = pnand %p1349_p1, %p1346_p0 }
   0x9   :  { %1354 = shalt.err (!%p1351_p2)
}
   0xa   :  { %s1355_s10 = scalar_lea.vmem %s32_s25, 512  ;;  %p1360_p4 = scmp.lt.s32.totalorder %s32_s25, %s32_s25 }
   0xb   :  { %p1356_p3 = scmp.ne.s32.totalorder %s32_s25, %s1355_s10  ;;  %p1361_p5 = scmp.lt.s32.totalorder %s1355_s10, %s1355_s10 }
   0xd   :  { %p1362_p6 = por %p1361_p5, %p1360_p4 }
   0xf   :  { %p1363_p7 = pnand %p1362_p6, %p1356_p3 }
  0x11   :  { %1366 = shalt.err (!%p1363_p7)
}
  0x12   :  { %s1464_s11 = smov 128   ;;  %s1465_s12 = smov 8  }
  0x13   :  { %37 = dma.hbm_to_vmem [thread:$0]  %s1601_s1, 512, %s32_s25, [#allocation6], %s1464_s11, %s1464_s11, %s1465_s12  }
  0x14   :  { %s1466_s15 = smov [#allocation2]   ;;  %s1467_s17 = smov [#allocation7]  }
  0x15   :  { %s22_s16 = sshll.u32 %s1466_s15, 4  ;;  %s45_s18 = sshll.u32 %s1467_s17, 4  ;;  %s23_s16 = int_to_ptr.vmem [resolvable:$true] %s22_s16  ;;  %s46_s18 = int_to_ptr.vmem [resolvable:$true] %s45_s18 }
  0x16   :  { %s1367_s21 = scalar_lea.hbm %s1600_s0, 64 }
  0x17   :  { %p1368_p8 = scmp.ne.s32.totalorder %s1600_s0, %s1367_s21  ;;  %p1371_p9 = scmp.lt.u32.totalorder %s1367_s21, %s1600_s0 }
  0x19   :  { %p1373_p10 = pnand %p1371_p9, %p1368_p8 }
  0x1b   :  { %1376 = shalt.err (!%p1373_p10)
}
  0x1c   :  { %s1377_s1 = scalar_lea.vmem %s23_s16, 64  ;;  %p1382_p12 = scmp.lt.s32.totalorder %s23_s16, %s23_s16 }
  0x1d   :  { %p1378_p11 = scmp.ne.s32.totalorder %s23_s16, %s1377_s1  ;;  %p1383_p13 = scmp.lt.s32.totalorder %s1377_s1, %s1377_s1 }
  0x1f   :  { %p1384_p0 = por %p1383_p13, %p1382_p12 }
  0x21   :  { %p1385_p1 = pnand %p1384_p0, %p1378_p11 }
  0x23   :  { %1388 = shalt.err (!%p1385_p1)
}
  0x24   :  { %25 = dma.hbm_to_vmem [thread:$0]  %s1600_s0, 64, %s23_s16, [#allocation3]  }
  0x25   :  { %s1389_s30 = scalar_lea.hbm %s1603_s3, 8192 }
  0x26   :  { %p1390_p2 = scmp.ne.s32.totalorder %s1603_s3, %s1389_s30  ;;  %p1393_p3 = scmp.lt.u32.totalorder %s1389_s30, %s1603_s3 }
  0x28   :  { %p1395_p4 = pnand %p1393_p3, %p1390_p2 }
  0x2a   :  { %1398 = shalt.err (!%p1395_p4)
}
  0x2b   :  { %s1399_s12 = scalar_lea.vmem %s46_s18, 8192  ;;  %p1404_p6 = scmp.lt.s32.totalorder %s46_s18, %s46_s18 }
  0x2c   :  { %p1400_p5 = scmp.ne.s32.totalorder %s46_s18, %s1399_s12  ;;  %p1405_p7 = scmp.lt.s32.totalorder %s1399_s12, %s1399_s12 }
  0x2e   :  { %p1406_p8 = por %p1405_p7, %p1404_p6 }
  0x30   :  { %p1407_p9 = pnand %p1406_p8, %p1400_p5 }
  0x32   :  { %1410 = shalt.err (!%p1407_p9)
}
  0x33   :  { %s1468_s0 = smov 256   ;;  %s1469_s13 = smov 16  }
  0x34   :  { %51 = dma.hbm_to_vmem [thread:$0]  %s1603_s3, 8192, %s46_s18, [#allocation6], %s1468_s0, %s1468_s0, %s1469_s13  }
  0x35   :  { %s1470_s16 = smov [#allocation8]   ;;  %s1411_s21 = scalar_lea.hbm %s1605_s5, 4096 }
  0x36   :  { %s59_s17 = sshll.u32 %s1470_s16, 4  ;;  %p1412_p10 = scmp.ne.s32.totalorder %s1605_s5, %s1411_s21  ;;  %s60_s17 = int_to_ptr.vmem [resolvable:$true] %s59_s17 }
  0x37   :  { %p1415_p11 = scmp.lt.u32.totalorder %s1411_s21, %s1605_s5 }
  0x39   :  { %p1417_p12 = pnand %p1415_p11, %p1412_p10 }
  0x3b   :  { %1420 = shalt.err (!%p1417_p12)
}
  0x3c   :  { %s1421_s1 = scalar_lea.vmem %s60_s17, 4096  ;;  %p1426_p0 = scmp.lt.s32.totalorder %s60_s17, %s60_s17 }
  0x3d   :  { %p1422_p13 = scmp.ne.s32.totalorder %s60_s17, %s1421_s1  ;;  %p1427_p1 = scmp.lt.s32.totalorder %s1421_s1, %s1421_s1 }
  0x3f   :  { %p1428_p2 = por %p1427_p1, %p1426_p0 }
  0x41   :  { %p1429_p3 = pnand %p1428_p2, %p1422_p13 }
  0x43   :  { %1432 = shalt.err (!%p1429_p3)
}
  0x44   :  { %s1471_s3 = smov 64   ;;  %s1472_s18 = smov 4  }
  0x45   :  { %65 = dma.hbm_to_vmem [thread:$0]  %s1605_s5, 4096, %s60_s17, [#allocation9], %s1471_s3, %s1471_s3, %s1472_s18  }
  0x46   :  { %1455 = dma.done.wait [#allocation3], 64  }
  0x47   :  { %1456 = vsyncadd [#allocation3], 4294967232 }
  0x48   :  { %1457 = dma.done.wait [#allocation6], 8704  }
  0x49   :  { %1458 = vsyncadd [#allocation6], 4294958592 }
  0x4a   :  { %1459 = dma.done.wait [#allocation9], 4096  }
  0x4b   :  { %1460 = vsyncadd [#allocation9], 4294963200  ;;  %v1473_v0 = vmov 0   ;;  %v1207_v1 = vld [vmem:[#allocation5 + $0x4] ss:$8 sps:$4 sm:$0xff]   ;;  %vm119_vm0 = vcmask 261120  }
  0x4c   :  { %155 = vmatprep.mubr.bf16.mxu0 %v1473_v0  ;;  %v1209_v2 = vld [vmem:[#allocation5] ss:$8 sps:$4 sm:$0xff]   ;;  %123 = vmatprep.subr.bf16.mxu0 %v1207_v1  ;;  %v1210_v3 = vld [vmem:[#allocation5 + $0x14] ss:$8 sps:$4 sm:$0xff]   ;;  %v1212_v4 = vld [vmem:[#allocation5 + $0x10] ss:$8 sps:$4 sm:$0xff]  }
  0x4d   :  { %v81_v5 = vld [vmem:[#allocation2] sm:$0xf]  ;;  %124 = vmatpush1.bf16.msra.mxu0 %v1209_v2  ;;  %v1213_v6 = vld [vmem:[#allocation7 + $0x4] ss:$16 sps:$4 sm:$0xff]   ;;  %v1218_v8 = vld [vmem:[#allocation7] ss:$16 sps:$4 sm:$0xff]  }
  0x4e   :  { %125 = vmatprep.subr.bf16.mxu0 %v1210_v3  ;;  %574 = vmatprep.subr.bf16.mxu1 %v1213_v6  ;;  %v1217_v7 = vld [vmem:[#allocation7 + $0xc] ss:$16 sps:$4 sm:$0xff]   ;;  %v82_v9 = vpack.c.bf16 %v81_v5, %v81_v5  ;;  %v1219_v10 = vld [vmem:[#allocation7 + $0x24] ss:$16 sps:$4 sm:$0xff]   ;;  %v1215_v11 = vld [vmem:[#allocation7 + $0x8] ss:$16 sps:$4 sm:$0xff]  }
  0x4f   :  { %575 = vmatpush1.bf16.msra.mxu1 %v1218_v8  ;;  %v1223_v12 = vld [vmem:[#allocation7 + $0x2c] ss:$16 sps:$4 sm:$0xff]   ;;  %v1224_v13 = vld [vmem:[#allocation7 + $0x20] ss:$16 sps:$4 sm:$0xff]   ;;  %v1225_v14 = vld [vmem:[#allocation7 + $0x44] ss:$16 sps:$4 sm:$0xff]  }
  0x50   :  { %576 = vmatprep.subr.bf16.mxu1 %v1219_v10  ;;  %v1221_v15 = vld [vmem:[#allocation7 + $0x28] ss:$16 sps:$4 sm:$0xff]   ;;  %v1229_v16 = vld [vmem:[#allocation7 + $0x4c] ss:$16 sps:$4 sm:$0xff]   ;;  %v1230_v17 = vld [vmem:[#allocation7 + $0x40] ss:$16 sps:$4 sm:$0xff]  }
  0x51   :  { %126 = vmatpush1.bf16.msra.mxu0 %v1212_v4  ;;  %v1231_v18 = vld [vmem:[#allocation7 + $0x64] ss:$16 sps:$4 sm:$0xff]   ;;  %v1227_v19 = vld [vmem:[#allocation7 + $0x48] ss:$16 sps:$4 sm:$0xff]   ;;  %v1235_v20 = vld [vmem:[#allocation7 + $0x6c] ss:$16 sps:$4 sm:$0xff]  }
  0x52   :  { %615 = vmatprep.subr.bf16.mxu0 %v1217_v7  ;;  %v1236_v21 = vld [vmem:[#allocation7 + $0x60] ss:$16 sps:$4 sm:$0xff]   ;;  %v1237_v22 = vld [vmem:[#allocation7 + $0x84] ss:$16 sps:$4 sm:$0xff]   ;;  %v1233_v23 = vld [vmem:[#allocation7 + $0x68] ss:$16 sps:$4 sm:$0xff]  }
  0x53   :  { %577 = vmatpush1.bf16.msra.mxu1 %v1224_v13  ;;  %v1241_v24 = vld [vmem:[#allocation7 + $0x8c] ss:$16 sps:$4 sm:$0xff]   ;;  %v1242_v25 = vld [vmem:[#allocation7 + $0x80] ss:$16 sps:$4 sm:$0xff]   ;;  %v1243_v26 = vld [vmem:[#allocation7 + $0xa4] ss:$16 sps:$4 sm:$0xff]  }
  0x54   :  { %1053 = vmatmul.mubr.msk.bf16.vlgmr.msra.gmra.mrb[0].mxu0 %vm119_vm0, %v82_v9  ;;  %578 = vmatprep.subr.bf16.mxu1 %v1225_v14  ;;  %v1239_v27 = vld [vmem:[#allocation7 + $0x88] ss:$16 sps:$4 sm:$0xff]   ;;  %v1247_v28 = vld [vmem:[#allocation7 + $0xac] ss:$16 sps:$4 sm:$0xff]   ;;  %v1248_v29 = vld [vmem:[#allocation7 + $0xa0] ss:$16 sps:$4 sm:$0xff]   ;;  %v89_v9 = vlaneseq }
  0x55   :  { %616 = vmatpush1.bf16.msra.mxu0 %v1215_v11  ;;  %v1249_v30 = vld [vmem:[#allocation7 + $0xc4] ss:$16 sps:$4 sm:$0xff]   ;;  %v1245_v31 = vld [vmem:[#allocation7 + $0xa8] ss:$16 sps:$4 sm:$0xff]   ;;  %v1253_v32 = vld [vmem:[#allocation7 + $0xcc] ss:$16 sps:$4 sm:$0xff]  }
  0x56   :  { %617 = vmatprep.subr.bf16.mxu0 %v1223_v12  ;;  %v1254_v33 = vld [vmem:[#allocation7 + $0xc0] ss:$16 sps:$4 sm:$0xff]   ;;  %v1255_v34 = vld [vmem:[#allocation7 + $0xe4] ss:$16 sps:$4 sm:$0xff]   ;;  %v1251_v35 = vld [vmem:[#allocation7 + $0xc8] ss:$16 sps:$4 sm:$0xff]  }
  0x57   :  { %579 = vmatpush1.bf16.msra.mxu1 %v1230_v17  ;;  %v1259_v36 = vld [vmem:[#allocation7 + $0xec] ss:$16 sps:$4 sm:$0xff]   ;;  %v1260_v37 = vld [vmem:[#allocation7 + $0xe0] ss:$16 sps:$4 sm:$0xff]   ;;  %v1261_v38 = vld [vmem:[#allocation7 + $0x104] ss:$16 sps:$4 sm:$0xff]  }
  0x58   :  { %580 = vmatprep.subr.bf16.mxu1 %v1231_v18  ;;  %v1257_v39 = vld [vmem:[#allocation7 + $0xe8] ss:$16 sps:$4 sm:$0xff]   ;;  %v1265_v40 = vld [vmem:[#allocation7 + $0x10c] ss:$16 sps:$4 sm:$0xff]   ;;  %v1266_v41 = vld [vmem:[#allocation7 + $0x100] ss:$16 sps:$4 sm:$0xff]  }
  0x59   :  { %618 = vmatpush1.bf16.msra.mxu0 %v1221_v15  ;;  %v1267_v42 = vld [vmem:[#allocation7 + $0x124] ss:$16 sps:$4 sm:$0xff]   ;;  %v1263_v43 = vld [vmem:[#allocation7 + $0x108] ss:$16 sps:$4 sm:$0xff]   ;;  %v1272_v44 = vld [vmem:[#allocation7 + $0x120] ss:$16 sps:$4 sm:$0xff]  }
  0x5a   :  { %619 = vmatprep.subr.bf16.mxu0 %v1229_v16  ;;  %v1271_v45 = vld [vmem:[#allocation7 + $0x12c] ss:$16 sps:$4 sm:$0xff]   ;;  %v1273_v46 = vld [vmem:[#allocation7 + $0x144] ss:$16 sps:$4 sm:$0xff]   ;;  %v1269_v47 = vld [vmem:[#allocation7 + $0x128] ss:$16 sps:$4 sm:$0xff]  }
  0x5b   :  { %581 = vmatpush1.bf16.msra.mxu1 %v1236_v21  ;;  %v1278_v48 = vld [vmem:[#allocation7 + $0x140] ss:$16 sps:$4 sm:$0xff]   ;;  %v1277_v49 = vld [vmem:[#allocation7 + $0x14c] ss:$16 sps:$4 sm:$0xff]   ;;  %v1279_v50 = vld [vmem:[#allocation7 + $0x164] ss:$16 sps:$4 sm:$0xff]  }
  0x5c   :  { %582 = vmatprep.subr.bf16.mxu1 %v1237_v22  ;;  %v1275_v51 = vld [vmem:[#allocation7 + $0x148] ss:$16 sps:$4 sm:$0xff]   ;;  %v1284_v52 = vld [vmem:[#allocation7 + $0x160] ss:$16 sps:$4 sm:$0xff]   ;;  %v1283_v53 = vld [vmem:[#allocation7 + $0x16c] ss:$16 sps:$4 sm:$0xff]  }
  0x5d   :  { %620 = vmatpush1.bf16.msra.mxu0 %v1227_v19  ;;  %v1285_v54 = vld [vmem:[#allocation7 + $0x184] ss:$16 sps:$4 sm:$0xff]   ;;  %v1281_v55 = vld [vmem:[#allocation7 + $0x168] ss:$16 sps:$4 sm:$0xff]   ;;  %v1290_v56 = vld [vmem:[#allocation7 + $0x180] ss:$16 sps:$4 sm:$0xff]  }
  0x5e   :  { %621 = vmatprep.subr.bf16.mxu0 %v1235_v20  ;;  %v1289_v57 = vld [vmem:[#allocation7 + $0x18c] ss:$16 sps:$4 sm:$0xff]   ;;  %v1291_v58 = vld [vmem:[#allocation7 + $0x1a4] ss:$16 sps:$4 sm:$0xff]   ;;  %v1287_v59 = vld [vmem:[#allocation7 + $0x188] ss:$16 sps:$4 sm:$0xff]  }
  0x5f   :  { %583 = vmatpush1.bf16.msra.mxu1 %v1242_v25  ;;  %v1296_v60 = vld [vmem:[#allocation7 + $0x1a0] ss:$16 sps:$4 sm:$0xff]   ;;  %v1295_v61 = vld [vmem:[#allocation7 + $0x1ac] ss:$16 sps:$4 sm:$0xff]   ;;  %v1293_v62 = vld [vmem:[#allocation7 + $0x1a8] ss:$16 sps:$4 sm:$0xff]  }
  0x60   :  { %584 = vmatprep.subr.bf16.mxu1 %v1243_v26  ;;  %v1297_v63 = vld [vmem:[#allocation7 + $0x1c4] ss:$16 sps:$4 sm:$0xff]   ;;  %v1301_v0 = vld [vmem:[#allocation7 + $0x1cc] ss:$16 sps:$4 sm:$0xff]   ;;  %v1299_v1 = vld [vmem:[#allocation7 + $0x1c8] ss:$16 sps:$4 sm:$0xff]  }
  0x61   :  { %622 = vmatpush1.bf16.msra.mxu0 %v1233_v23  ;;  %v1302_v2 = vld [vmem:[#allocation7 + $0x1c0] ss:$16 sps:$4 sm:$0xff]   ;;  %v1303_v3 = vld [vmem:[#allocation7 + $0x1e4] ss:$16 sps:$4 sm:$0xff]   ;;  %v1307_v4 = vld [vmem:[#allocation7 + $0x1ec] ss:$16 sps:$4 sm:$0xff]  }
  0x62   :  { %623 = vmatprep.subr.bf16.mxu0 %v1241_v24  ;;  %v1305_v5 = vld [vmem:[#allocation7 + $0x1e8] ss:$16 sps:$4 sm:$0xff]   ;;  %v1308_v6 = vld [vmem:[#allocation7 + $0x1e0] ss:$16 sps:$4 sm:$0xff]   ;;  %v1564_v10 = vshrl.u32 %v89_v9, 7  ;;  %vm1007_vm1 = vcmask 1043456  }
  0x63   :  { %585 = vmatpush1.bf16.msra.mxu1 %v1248_v29  ;;  %v1309_v7 = vld [vmem:[#allocation8 + $0x40] sm:$0xff]   ;;  %v87_v12 = vld [vmem:[%s1602_s2] sm:$0x3]  ;;  %v1314_v29 = vld [vmem:[#allocation8 + $0xc8] sm:$0xff]  }
  0x64   :  { %586 = vmatprep.subr.bf16.mxu1 %v1249_v30  ;;  %v1310_v8 = vld [vmem:[#allocation8 + $0xc0] sm:$0xff]   ;;  %v91_v11 = vsub.s32 0, %v1564_v10  ;;  %v95_v13 = vsub.s32 1, %v1564_v10  ;;  %v1315_v30 = vld [vmem:[#allocation8 + $0x8] sm:$0xff]  }
  0x65   :  { %624 = vmatpush1.bf16.msra.mxu0 %v1239_v27  ;;  %v1311_v25 = vld [vmem:[#allocation8] sm:$0xff]  }
  0x66   :  { %625 = vmatprep.subr.bf16.mxu0 %v1247_v28  ;;  %v92_v14 = vrot.slane %v87_v12, %v91_v11  ;;  %v96_v15 = vrot.slane %v87_v12, %v95_v13  ;;  %v1312_v26 = vld [vmem:[#allocation8 + $0x80] sm:$0xff]   ;;  %v1313_v28 = vld [vmem:[#allocation8 + $0x48] sm:$0xff]  }
  0x67   :  { %587 = vmatpush1.bf16.msra.mxu1 %v1254_v33  ;;  %v1318_v33 = vld [vmem:[#allocation8 + $0xd0] sm:$0xff]  }
  0x68   :  { %588 = vmatprep.subr.bf16.mxu1 %v1255_v34  ;;  %v1319_v34 = vld [vmem:[#allocation8 + $0x10] sm:$0xff]  }
  0x69   :  { %626 = vmatpush1.bf16.msra.mxu0 %v1245_v31  ;;  %v1316_v31 = vld [vmem:[#allocation8 + $0x88] sm:$0xff]  }
  0x6a   :  { %627 = vmatprep.subr.bf16.mxu0 %v1253_v32  ;;  %v1317_v32 = vld [vmem:[#allocation8 + $0x50] sm:$0xff]  }
  0x6b   :  { %589 = vmatpush1.bf16.msra.mxu1 %v1260_v37  ;;  %v1322_v37 = vld [vmem:[#allocation8 + $0xd8] sm:$0xff]  }
  0x6c   :  { %590 = vmatprep.subr.bf16.mxu1 %v1261_v38  ;;  %v1323_v38 = vld [vmem:[#allocation8 + $0x18] sm:$0xff]  }
  0x6d   :  { %628 = vmatpush1.bf16.msra.mxu0 %v1251_v35  ;;  %v1320_v35 = vld [vmem:[#allocation8 + $0x90] sm:$0xff]  }
  0x6e   :  { %629 = vmatprep.subr.bf16.mxu0 %v1259_v36  ;;  %v1321_v36 = vld [vmem:[#allocation8 + $0x58] sm:$0xff]  }
  0x6f   :  { %591 = vmatpush1.bf16.msra.mxu1 %v1266_v41  ;;  %v1326_v41 = vld [vmem:[#allocation8 + $0xe0] sm:$0xff]  }
  0x70   :  { %592 = vmatprep.subr.bf16.mxu1 %v1267_v42  ;;  %v1327_v42 = vld [vmem:[#allocation8 + $0x20] sm:$0xff]  }
  0x71   :  { %630 = vmatpush1.bf16.msra.mxu0 %v1257_v39  ;;  %v1324_v39 = vld [vmem:[#allocation8 + $0x98] sm:$0xff]  }
  0x72   :  { %631 = vmatprep.subr.bf16.mxu0 %v1265_v40  ;;  %v1325_v40 = vld [vmem:[#allocation8 + $0x60] sm:$0xff]  }
  0x73   :  { %593 = vmatpush1.bf16.msra.mxu1 %v1272_v44  ;;  %v1329_v44 = vld [vmem:[#allocation8 + $0x68] sm:$0xff]  }
  0x74   :  { %594 = vmatprep.subr.bf16.mxu1 %v1273_v46  ;;  %v1331_v46 = vld [vmem:[#allocation8 + $0x28] sm:$0xff]  }
  0x75   :  { %632 = vmatpush1.bf16.msra.mxu0 %v1263_v43  ;;  %v1328_v43 = vld [vmem:[#allocation8 + $0xa0] sm:$0xff]  }
  0x76   :  { %633 = vmatprep.subr.bf16.mxu0 %v1271_v45  ;;  %v1330_v45 = vld [vmem:[#allocation8 + $0xe8] sm:$0xff]  }
  0x77   :  { %595 = vmatpush1.bf16.msra.mxu1 %v1278_v48  ;;  %v1333_v48 = vld [vmem:[#allocation8 + $0x70] sm:$0xff]  }
  0x78   :  { %596 = vmatprep.subr.bf16.mxu1 %v1279_v50  ;;  %v1335_v50 = vld [vmem:[#allocation8 + $0x30] sm:$0xff]  }
  0x79   :  { %634 = vmatpush1.bf16.msra.mxu0 %v1269_v47  ;;  %v1332_v47 = vld [vmem:[#allocation8 + $0xa8] sm:$0xff]  }
  0x7a   :  { %635 = vmatprep.subr.bf16.mxu0 %v1277_v49  ;;  %v1334_v49 = vld [vmem:[#allocation8 + $0xf0] sm:$0xff]  }
  0x7b   :  { %597 = vmatpush1.bf16.msra.mxu1 %v1284_v52  ;;  %v1337_v52 = vld [vmem:[#allocation8 + $0x78] sm:$0xff]  }
  0x7c   :  { %598 = vmatprep.subr.bf16.mxu1 %v1285_v54  ;;  %v1339_v54 = vld [vmem:[#allocation8 + $0x38] sm:$0xff]  }
  0x7d   :  { %636 = vmatpush1.bf16.msra.mxu0 %v1275_v51  ;;  %v1336_v51 = vld [vmem:[#allocation8 + $0xb0] sm:$0xff]  }
  0x7e   :  { %637 = vmatprep.subr.bf16.mxu0 %v1283_v53  ;;  %v1338_v53 = vld [vmem:[#allocation8 + $0xf8] sm:$0xff]  }
  0x7f   :  { %599 = vmatpush1.bf16.msra.mxu1 %v1290_v56  ;;  %v244_v56 = vsub.s32 2, %v1564_v10 }
  0x80   :  { %600 = vmatprep.subr.bf16.mxu1 %v1291_v58  ;;  %v248_v58 = vsub.s32 3, %v1564_v10 }
  0x81   :  { %638 = vmatpush1.bf16.msra.mxu0 %v1281_v55  ;;  %v1340_v55 = vld [vmem:[#allocation8 + $0xb8] sm:$0xff]  }
  0x82   :  { %639 = vmatprep.subr.bf16.mxu0 %v1289_v57  ;;  %v232_v57 = vld [vmem:[%s1604_s4] sm:$0xf] }
  0x83   :  { %601 = vmatpush1.bf16.msra.mxu1 %v1296_v60  ;;  %v245_v60 = vrot.slane %v232_v57, %v244_v56 }
  0x84   :  { %602 = vmatprep.subr.bf16.mxu1 %v1297_v63 }
  0x85   :  { %640 = vmatpush1.bf16.msra.mxu0 %v1287_v59  ;;  %v237_v59 = vrot.slane %v232_v57, %v91_v11 }
  0x86   :  { %641 = vmatprep.subr.bf16.mxu0 %v1295_v61  ;;  %v241_v61 = vrot.slane %v232_v57, %v95_v13 }
  0x87   :  { %603 = vmatpush1.bf16.msra.mxu1 %v1302_v2 }
  0x88   :  { %604 = vmatprep.subr.bf16.mxu1 %v1303_v3 }
  0x89   :  { %642 = vmatpush1.bf16.msra.mxu0 %v1293_v62  ;;  %v249_v62 = vrot.slane %v232_v57, %v248_v58 }
  0x8a   :  { %643 = vmatprep.subr.bf16.mxu0 %v1301_v0 }
  0x8b   :  { %605 = vmatpush1.bf16.msra.mxu1 %v1308_v6 }
  0x8c   :  { %1151 = vmatprep.subr.bf16.mxu1 %v1309_v7 }
  0x8d   :  { %644 = vmatpush1.bf16.msra.mxu0 %v1299_v1 }
  0x8e   :  { %645 = vmatprep.subr.bf16.mxu0 %v1307_v4 }
  0x91   :  { %646 = vmatpush1.bf16.msra.mxu0 %v1305_v5 }
  0x92   :  { %1173 = vmatprep.subr.bf16.mxu0 %v1310_v8 }
 0x127   :  { %v157_v16 = vpop.f32.mrb[0].mxu0 }
 0x128   :  { %v158_v17 = vadd.f32 %v157_v16, %v92_v14  ;;  %v159_v18 = vpop.f32.mrb[1].mxu0 }
 0x129   :  { %v160_v19 = vadd.f32 %v159_v18, %v96_v15  ;;  %v161_v20 = vpop.f32.mrb[2].mxu0 }
 0x12a   :  { %v164_v21 = vmax.f32 %v158_v17, 0.0  ;;  %v162_v22 = vpop.f32.mrb[3].mxu0 }
 0x12b   :  { %v165_v23 = vmax.f32 %v160_v19, 0.0  ;;  %v1118_v22 = vld [vmem:[%s1606_s6] ss:$0 sm:$0xff]  ;;  %s1474_s6 = smov [#allocation10]  }
 0x12c   :  { %v166_v27 = vpack.c.bf16 %v164_v21, %v164_v21  ;;  %s1038_s8 = sshll.u32 %s1474_s6, 4  ;;  %s1039_s8 = int_to_ptr.vmem [resolvable:$true] %s1038_s8 }
 0x12d   :  { %v167_v24 = vpack.c.bf16 %v165_v23, %v165_v23  ;;  %s1433_s9 = scalar_lea.vmem %s1039_s8, 64  ;;  %p1438_p5 = scmp.lt.s32.totalorder %s1039_s8, %s1039_s8 }
 0x12e   :  { %p1434_p4 = scmp.ne.s32.totalorder %s1039_s8, %s1433_s9  ;;  %p1439_p6 = scmp.lt.s32.totalorder %s1433_s9, %s1433_s9 }
 0x12f   :  { %606 = vmatprep.mubr.bf16.mxu1 %v167_v24  ;;  %647 = vmatprep.mubr.bf16.mxu0 %v167_v24 }
 0x130   :  { %607 = vmatmul.mubr.bf16.vlgmr.msra.gmra.mrb[0].mxu1 %v166_v27  ;;  %648 = vmatmul.mubr.bf16.vlgmr.msra.gmra.mrb[4].mxu0 %v166_v27  ;;  %p1440_p7 = por %p1439_p6, %p1438_p5 }
 0x131   :  { %1152 = vmatpush3.bf16.msra.mxu1 %v1311_v25  ;;  %1174 = vmatpush3.bf16.msra.mxu0 %v1312_v26 }
 0x132   :  { %1153 = vmatprep.subr.bf16.mxu1 %v1313_v28  ;;  %1175 = vmatprep.subr.bf16.mxu0 %v1314_v29  ;;  %p1441_p8 = pnand %p1440_p7, %p1434_p4 }
 0x135   :  { %1154 = vmatpush3.bf16.msra.mxu1 %v1315_v30  ;;  %1176 = vmatpush3.bf16.msra.mxu0 %v1316_v31 }
 0x136   :  { %1155 = vmatprep.subr.bf16.mxu1 %v1317_v32  ;;  %1177 = vmatprep.subr.bf16.mxu0 %v1318_v33 }
 0x139   :  { %1156 = vmatpush3.bf16.msra.mxu1 %v1319_v34  ;;  %1178 = vmatpush3.bf16.msra.mxu0 %v1320_v35 }
 0x13a   :  { %1157 = vmatprep.subr.bf16.mxu1 %v1321_v36  ;;  %1179 = vmatprep.subr.bf16.mxu0 %v1322_v37 }
 0x13d   :  { %1158 = vmatpush3.bf16.msra.mxu1 %v1323_v38  ;;  %1180 = vmatpush3.bf16.msra.mxu0 %v1324_v39 }
 0x13e   :  { %1159 = vmatprep.subr.bf16.mxu1 %v1325_v40  ;;  %1181 = vmatprep.subr.bf16.mxu0 %v1326_v41 }
 0x141   :  { %1160 = vmatpush3.bf16.msra.mxu1 %v1327_v42  ;;  %1182 = vmatpush3.bf16.msra.mxu0 %v1328_v43 }
 0x142   :  { %1161 = vmatprep.subr.bf16.mxu1 %v1329_v44  ;;  %1183 = vmatprep.subr.bf16.mxu0 %v1330_v45 }
 0x145   :  { %1162 = vmatpush3.bf16.msra.mxu1 %v1331_v46  ;;  %1184 = vmatpush3.bf16.msra.mxu0 %v1332_v47 }
 0x146   :  { %1163 = vmatprep.subr.bf16.mxu1 %v1333_v48  ;;  %1185 = vmatprep.subr.bf16.mxu0 %v1334_v49 }
 0x149   :  { %1164 = vmatpush3.bf16.msra.mxu1 %v1335_v50  ;;  %1186 = vmatpush3.bf16.msra.mxu0 %v1336_v51  ;;  %v1028_v50 = vand.u32 127, %v89_v9 }
 0x14a   :  { %1165 = vmatprep.subr.bf16.mxu1 %v1337_v52  ;;  %1187 = vmatprep.subr.bf16.mxu0 %v1338_v53 }
 0x14b   :  { %vm1029_vm2 = vcmp.lt.s32.totalorder %v1028_v50, 8 }
 0x14d   :  { %1166 = vmatpush3.bf16.msra.mxu1 %v1339_v54  ;;  %1188 = vmatpush3.bf16.msra.mxu0 %v1340_v55 }
 0x203   :  { %v608_v63 = vpop.f32.mrb[0].mxu1  ;;  %v649_v0 = vpop.f32.mrb[4].mxu0 }
 0x204   :  { %v609_v1 = vadd.f32 %v608_v63, %v237_v59  ;;  %v650_v2 = vadd.f32 %v649_v0, %v245_v60  ;;  %v610_v3 = vpop.f32.mrb[1].mxu1  ;;  %v651_v4 = vpop.f32.mrb[5].mxu0 }
 0x205   :  { %v611_v5 = vadd.f32 %v610_v3, %v241_v61  ;;  %v652_v6 = vadd.f32 %v651_v4, %v249_v62  ;;  %v612_v7 = vpop.f32.mrb[2].mxu1  ;;  %v653_v8 = vpop.f32.mrb[6].mxu0 }
 0x206   :  { %v656_v12 = vmax.f32 %v609_v1, 0.0  ;;  %v658_v14 = vmax.f32 %v650_v2, 0.0  ;;  %v613_v15 = vpop.f32.mrb[3].mxu1  ;;  %v654_v16 = vpop.f32.mrb[7].mxu0 }
 0x207   :  { %v657_v11 = vmax.f32 %v611_v5, 0.0  ;;  %v659_v17 = vmax.f32 %v652_v6, 0.0 }
 0x208   :  { %v660_v13 = vpack.c.bf16 %v656_v12, %v656_v12  ;;  %v662_v19 = vpack.c.bf16 %v658_v14, %v658_v14 }
 0x209   :  { %v661_v18 = vpack.c.bf16 %v657_v11, %v657_v11  ;;  %v663_v10 = vpack.c.bf16 %v659_v17, %v659_v17 }
 0x20b   :  { %959 = vmatprep.mubr.bf16.mxu1 %v661_v18  ;;  %999 = vmatprep.mubr.bf16.mxu0 %v663_v10 }
 0x20c   :  { %960 = vmatmul.mubr.bf16.vlgmr.msra.gmra.mrb[4].mxu1 %v660_v13  ;;  %1000 = vmatmul.mubr.bf16.vlgmr.msra.gmra.mrb[8].mxu0 %v662_v19 }
 0x2df   :  { %v1167_v20 = vpop.f32.mrb[4].mxu1  ;;  %v1189_v21 = vpop.f32.mrb[8].mxu0 }
 0x2e0   :  { %v1168_v23 = vpop.f32.mrb[5].mxu1  ;;  %v1190_v24 = vpop.f32.mrb[9].mxu0 }
 0x2e1   :  { %v1169_v25 = vadd.f32 %v1168_v23, %v1167_v20  ;;  %v1191_v26 = vadd.f32 %v1190_v24, %v1189_v21  ;;  %v1170_v27 = vpop.f32.mrb[6].mxu1  ;;  %v1192_v28 = vpop.f32.mrb[10].mxu0 }
 0x2e2   :  { %v1171_v29 = vpop.f32.mrb[7].mxu1  ;;  %v1193_v30 = vpop.f32.mrb[11].mxu0 }
 0x2e3   :  { %v962_v31 = vadd.f32 %v1169_v25, %v1118_v22 }
 0x2e5   :  { %v1002_v32 = vadd.f32 %v1191_v26, %v962_v31 }
 0x2e7   :  { %v1008_v33 = vsel %vm1007_vm1, %v1002_v32, -inf }
 0x2e8   :  { %v1009_v34 = vrot.slane %v1008_v33, 4 }
 0x2ea   :  { %v1010_v35 = vmax.f32 %v1008_v33, %v1009_v34 }
 0x2ec   :  { %v1011_v36 = vrot.slane %v1010_v35, 2 }
 0x2ee   :  { %v1012_v37 = vmax.f32 %v1010_v35, %v1011_v36 }
 0x2f0   :  { %v1013_v38 = vrot.slane %v1012_v37, 1 }
 0x2f2   :  { %v1014_v39 = vmax.f32 %v1012_v37, %v1013_v38 }
 0x2f4   :  { %v1015_v40 = vsub.f32 %v1002_v32, %v1014_v39 }
 0x2f6   :  { %v1016_v41 = vmul.f32 1.442695, %v1015_v40 }
 0x2f8   :  { %1341 = vpow2.f32 %v1016_v41 }
 0x302   :  { %v1342_v42 = vpop.eup %1341 }
 0x303   :  { %v1018_v43 = vsel %vm1007_vm1, %v1342_v42, 0.0 }
 0x304   :  { %v1019_v44 = vrot.slane %v1018_v43, 4 }
 0x306   :  { %v1020_v45 = vadd.f32 %v1019_v44, %v1018_v43 }
 0x308   :  { %v1021_v46 = vrot.slane %v1020_v45, 2 }
 0x30a   :  { %v1022_v47 = vadd.f32 %v1021_v46, %v1020_v45 }
 0x30c   :  { %v1023_v48 = vrot.slane %v1022_v47, 1 }
 0x30e   :  { %v1024_v49 = vadd.f32 %v1023_v48, %v1022_v47 }
 0x310   :  { %1343 = vrcp.f32 %v1024_v49 }
 0x31a   :  { %v1344_v51 = vpop.eup %1343 }
 0x31b   :  { %v1026_v52 = vmul.f32 %v1344_v51, %v1342_v42 }
 0x31d   :  { %v1030_v53 = vsel %vm1029_vm2, %v1026_v52, %v1002_v32 }
 0x31e   :  { %1031 = vst [vmem:[#allocation10] sm:$0xf] %v1030_v53 }
 0x31f   :  { %1444 = shalt.err (!%p1441_p8)
}
 0x320   :  { %s1445_s12 = scalar_lea.hbm %s1607_s7, 64 }
 0x321   :  { %p1446_p9 = scmp.ne.s32.totalorder %s1607_s7, %s1445_s12  ;;  %p1449_p10 = scmp.lt.u32.totalorder %s1445_s12, %s1607_s7 }
 0x323   :  { %p1451_p11 = pnand %p1449_p10, %p1446_p9 }
 0x325   :  { %1454 = shalt.err (!%p1451_p11)
}
 0x326   :  { %1041 = dma.vmem_to_hbm [thread:$0]  %s1039_s8, 64, %s1607_s7, [#allocation4]  }
 0x327   :  { %1461 = dma.done.wait [#allocation4], 64  }
 0x328   :  { %1462 = vsyncadd [#allocation4], 4294967232 }
 0x329   :  { %1045 = vsyncpa [#allocation3], 1 }
 0x32a   :  { %1046 = vsyncpa [#allocation6], 1 }
 0x32b   :  { %1047 = vsyncpa [#allocation9], 1 }
 0x32c   :  { %1048 = vsyncpa [#allocation4], 1 }

</bundles_post_ra>
